<compile_context>
chip_gen: v6e
topology: v6e:2x2x1
jax: 0.10.0
libtpu: 0.0.40
codegen_flags: <defaults>
</compile_context>

<pallas_src>
import jax
import jax.numpy as jnp
from jax.experimental import pallas as pl
from jax.experimental.pallas import tpu as pltpu


def _round_up(v: int, m: int) -> int:
    return ((v + m - 1) // m) * m


def _cdiv(a: int, b: int) -> int:
    return (a + b - 1) // b


def _vmem_budget_bytes() -> int:
    """Generation-aware VMEM budget (~7/8 of per-core physical VMEM)."""
    phys = 64 << 20  # conservative fallback: v7x has 64 MiB per TensorCore
    try:
        info = pltpu.get_tpu_info()
        cap = getattr(info, "vmem_capacity_bytes", None)
        if cap:
            phys = int(cap)
    except Exception:
        pass
    return (phys * 7) // 8


def _linear_kernel(x_ref, wt_ref, b_ref, o_ref, acc_ref):
    # x_ref:   (tm, tk) tile of the input
    # wt_ref:  (tk, tn) tile of W.T (pre-transposed once outside -> no in-kernel transpose)
    # b_ref:   (1, tn)  float32 bias tile (varies only with the N grid axis)
    # o_ref:   (tm, tn) output tile (resident across the K reduction axis)
    # acc_ref: (tm, tn) float32 accumulator scratch
    k = pl.program_id(2)

    partial = jnp.dot(x_ref[...], wt_ref[...], preferred_element_type=jnp.float32)

    @pl.when(k == 0)
    def _():
        acc_ref[...] = partial            # direct write: no zero-init store per (i, j)

    @pl.when(k != 0)
    def _():
        acc_ref[...] += partial

    @pl.when(k == pl.num_programs(2) - 1)
    def _():
        o_ref[...] = (acc_ref[...] + b_ref[...]).astype(o_ref.dtype)


def linear_forward(x, weight, bias, *, tm=512, tn=512, tk=1024, compute_dtype=None):
    """y = x @ weight.T + bias via a tiled, pipelined Pallas TPU kernel.

    x:      (M, K)
    weight: (N, K)   (PyTorch convention: (output_dim, input_dim))
    bias:   (N,)
    compute_dtype: optional MXU operand dtype (e.g. jnp.bfloat16 on v6e/v7x);
                   accumulation stays float32 and the output keeps x's dtype.
    """
    M, K = x.shape
    N, Kw = weight.shape
    assert K == Kw, "input_dim mismatch"
    out_dtype = x.dtype

    cd = jnp.dtype(compute_dtype) if compute_dtype is not None else jnp.dtype(x.dtype)
    in_bytes = cd.itemsize
    out_bytes = jnp.dtype(out_dtype).itemsize

    # One-time layout prep outside the kernel (amortized across calls of a layer):
    # weight fed as (K, N) so the MXU contracts the K-major axis without an XLU transpose.
    x_c = x.astype(cd)
    w_t = weight.T.astype(cd)
    b2 = bias.reshape(1, N).astype(jnp.float32)

    # Packed-dtype sublane tile: (8,128) f32, (16,128) bf16, (32,128) int8/fp8.
    sub = max(8, 32 // max(in_bytes, 1))

    # Tile caps; K cap scales up for narrow dtypes (same VMEM footprint as f32 @ 1024).
    tm_cap = _round_up(tm, sub)
    tn_cap = _round_up(tn, 128)
    tk_cap = tk * max(1, 4 // in_bytes)

    budget = _vmem_budget_bytes()

    def working_set(btm, btn, btk):
        return (2 * (btm * btk + btk * btn) * in_bytes   # double-buffered x / W.T tiles
                + 2 * btn * 4                            # double-buffered bias tile
                + 2 * btm * btn * out_bytes              # double-buffered output tile
                + btm * btn * 4)                         # f32 accumulator scratch

    # Shrink caps (rarely triggered with defaults) so the working set fits the budget.
    while working_set(tm_cap, tn_cap, tk_cap) > budget:
        if tk_cap >= max(tm_cap, tn_cap) and tk_cap > 128:
            tk_cap //= 2
        elif tn_cap >= tm_cap and tn_cap > 128:
            tn_cap //= 2
        elif tm_cap > sub:
            tm_cap //= 2
        else:
            break

    # Clamp tiles to the problem: a block equal to the full dim when the dim is small
    # (no padding, no OOB blocks); otherwise an aligned tile with standard ragged edges.
    tm = M if M <= tm_cap else tm_cap
    tn = N if N <= tn_cap else tn_cap

    if K <= tk_cap:
        tk, Kp = K, K
    else:
        ksteps = _cdiv(K, tk_cap)
        tk = _round_up(_cdiv(K, ksteps), 128)
        Kp = tk * _cdiv(K, tk)

    # Zero-pad ONLY the K (contraction) tail -- required for correctness.  Ragged M/N
    # need no padding: out-of-bounds output rows/cols are discarded by Pallas.
    if Kp != K:
        x_c = jnp.pad(x_c, ((0, 0), (0, Kp - K)))
        w_t = jnp.pad(w_t, ((0, Kp - K), (0, 0)))

    gi, gj, gk = _cdiv(M, tm), _cdiv(N, tn), Kp // tk

    # v7x megacore: keep >=2 blocks on a parallel axis so both TensorCores get work
    # (no-op / negligible cost on single-TC v5e/v6e).
    if gi == 1 and gj == 1 and tn >= 256:
        tn = _round_up(_cdiv(tn, 2), 128)
        gj = _cdiv(N, tn)

    grid = (gi, gj, gk)

    vmem_limit = int(min(budget, max(2 * working_set(tm, tn, tk), 32 << 20)))

    # Revisit-aware traffic estimate: x is streamed once per N block, W.T once per M block.
    cost = pl.CostEstimate(
        flops=2 * M * N * Kp,
        transcendentals=0,
        bytes_accessed=(gi * gj * gk * (tm * tk + tk * tn) * in_bytes
                        + gj * tn * 4
                        + gi * gj * tm * tn * out_bytes),
    )

    y = pl.pallas_call(
        _linear_kernel,
        out_shape=jax.ShapeDtypeStruct((M, N), out_dtype),
        grid_spec=pltpu.PrefetchScalarGridSpec(
            num_scalar_prefetch=0,
            grid=grid,
            in_specs=[
                pl.BlockSpec((tm, tk), lambda i, j, k: (i, k)),   # x tile
                pl.BlockSpec((tk, tn), lambda i, j, k: (k, j)),   # W.T tile, (K, N) layout
                pl.BlockSpec((1, tn), lambda i, j, k: (0, j)),    # bias tile (N only)
            ],
            out_specs=pl.BlockSpec((tm, tn), lambda i, j, k: (i, j)),
            scratch_shapes=[pltpu.VMEM((tm, tn), jnp.float32)],
        ),
        compiler_params=pltpu.CompilerParams(
            dimension_semantics=("parallel", "parallel", "arbitrary"),
            vmem_limit_bytes=vmem_limit,
        ),
        cost_estimate=cost,
    )(x_c, w_t, b2)

    return y


if __name__ == "__main__":
    key = jax.random.PRNGKey(0)
    k1, k2, k3, k4 = jax.random.split(key, 4)

    # Case 1: small shapes matching the PyTorch module: (batch, input_dim) -> (batch, output_dim)
    batch, input_dim, output_dim = 8, 32, 16
    x = jax.random.normal(k1, (batch, input_dim), dtype=jnp.float32)
    # Parameter init matching the module: weight ~ N(0,1)*1e-3, bias = zeros.
    weight = jax.random.normal(k2, (output_dim, input_dim), dtype=jnp.float32) * 1e-3
    bias = jnp.zeros((output_dim,), dtype=jnp.float32)

    y = jax.block_until_ready(linear_forward(x, weight, bias))
    y_ref = x @ weight.T + bias
    assert y.shape == (batch, output_dim)
    assert jnp.allclose(y, y_ref, atol=1e-5, rtol=1e-5)

    # Case 2: ragged (non 8/128-aligned) shapes -> exercises edge-block handling (no pad/slice).
    m2, in2, out2 = 13, 40, 24
    x2 = jax.random.normal(k3, (m2, in2), dtype=jnp.float32)
    w2 = jax.random.normal(k4, (out2, in2), dtype=jnp.float32) * 1e-3
    b2v = jnp.zeros((out2,), dtype=jnp.float32)
    y2 = jax.block_until_ready(linear_forward(x2, w2, b2v))
    assert y2.shape == (m2, out2)
    assert jnp.allclose(y2, x2 @ w2.T + b2v, atol=1e-5, rtol=1e-5)

    # Case 3: bf16 MXU operands with f32 accumulation (fast path on v6e/v7x); relaxed tolerance
    # vs the fp32 reference because the products are computed in bf16.
    y3 = jax.block_until_ready(linear_forward(x, weight, bias, compute_dtype=jnp.bfloat16))
    assert jnp.allclose(y3, y_ref, atol=1e-3, rtol=2e-2)

    # TODO(synk): custom backward (LinearFunction.backward) is autograd plumbing, not part of
    # the forward kernel; dX/dW/db kernels would follow the same tiled-matmul pattern.
    print("KERNEL_OK")
</pallas_src>

<mosaic_0001>
module attributes {stable_mosaic.version = 11 : i64} {
  func.func @_linear_kernel(%arg0: i32, %arg1: i32, %arg2: i32, %arg3: memref<8x32xf32, #tpu.memory_space<vmem>>, %arg4: memref<32x16xf32, #tpu.memory_space<vmem>>, %arg5: memref<1x16xf32, #tpu.memory_space<vmem>>, %arg6: memref<8x16xf32, #tpu.memory_space<vmem>>, %arg7: memref<8x16xf32, #tpu.memory_space<vmem>>) attributes {dimension_semantics = [#tpu.dimension_semantics<parallel>, #tpu.dimension_semantics<parallel>, #tpu.dimension_semantics<arbitrary>], iteration_bounds = array<i64: 1, 1, 1>, scalar_prefetch = 0 : i64, scratch_operands = 1 : i64, tpu.core_type = #tpu.core_type<tc>, window_params = [{transform_indices = @transform_0, window_bounds = array<i64: 8, 32>}, {transform_indices = @transform_1, window_bounds = array<i64: 32, 16>}, {transform_indices = @transform_2, window_bounds = array<i64: 1, 16>}, {transform_indices = @transform_3, window_bounds = array<i64: 8, 16>}]} {
    %c0 = arith.constant 0 : index
    %c0_0 = arith.constant 0 : index
    %0 = vector.load %arg3[%c0, %c0_0] : memref<8x32xf32, #tpu.memory_space<vmem>>, vector<8x32xf32>
    %c0_1 = arith.constant 0 : index
    %c0_2 = arith.constant 0 : index
    %1 = vector.load %arg4[%c0_1, %c0_2] : memref<32x16xf32, #tpu.memory_space<vmem>>, vector<32x16xf32>
    %cst = arith.constant dense<0.000000e+00> : vector<8x16xf32>
    %2 = tpu.matmul %0, %1, %cst {dimension_numbers = #tpu.dot_dimension_numbers<[1], [0], [0], [1], [0, 0, 1, 1], [], []>} : vector<8x32xf32>, vector<32x16xf32>, vector<8x16xf32> -> vector<8x16xf32>
    %c0_i32 = arith.constant 0 : i32
    %3 = arith.cmpi eq, %arg2, %c0_i32 : i32
    %4 = arith.extui %3 : i1 to i32
    %c0_i32_3 = arith.constant 0 : i32
    %5 = arith.cmpi ne, %4, %c0_i32_3 : i32
    scf.if %5 {
      %c0_8 = arith.constant 0 : index
      %c0_9 = arith.constant 0 : index
      %12 = vector.load %arg7[%c0_8, %c0_9] : memref<8x16xf32, #tpu.memory_space<vmem>>, vector<8x16xf32>
      tpu.vector_store %arg7[%c0_8, %c0_9], %2 {strides = array<i32>} : memref<8x16xf32, #tpu.memory_space<vmem>>, vector<8x16xf32>,
    } else {
    }
    %c0_i32_4 = arith.constant 0 : i32
    %6 = arith.cmpi ne, %arg2, %c0_i32_4 : i32
    %7 = arith.extui %6 : i1 to i32
    %c0_i32_5 = arith.constant 0 : i32
    %8 = arith.cmpi ne, %7, %c0_i32_5 : i32
    scf.if %8 {
      %c0_8 = arith.constant 0 : index
      %c0_9 = arith.constant 0 : index
      %12 = vector.load %arg7[%c0_8, %c0_9] : memref<8x16xf32, #tpu.memory_space<vmem>>, vector<8x16xf32>
      %13 = arith.addf %12, %2 : vector<8x16xf32>
      %c0_10 = arith.constant 0 : index
      %c0_11 = arith.constant 0 : index
      %14 = vector.load %arg7[%c0_10, %c0_11] : memref<8x16xf32, #tpu.memory_space<vmem>>, vector<8x16xf32>
      tpu.vector_store %arg7[%c0_10, %c0_11], %13 {strides = array<i32>} : memref<8x16xf32, #tpu.memory_space<vmem>>, vector<8x16xf32>,
    } else {
    }
    %c0_i32_6 = arith.constant 0 : i32
    %9 = arith.cmpi eq, %arg2, %c0_i32_6 : i32
    %10 = arith.extui %9 : i1 to i32
    %c0_i32_7 = arith.constant 0 : i32
    %11 = arith.cmpi ne, %10, %c0_i32_7 : i32
    scf.if %11 {
      %c0_8 = arith.constant 0 : index
      %c0_9 = arith.constant 0 : index
      %12 = vector.load %arg7[%c0_8, %c0_9] : memref<8x16xf32, #tpu.memory_space<vmem>>, vector<8x16xf32>
      %c0_10 = arith.constant 0 : index
      %c0_11 = arith.constant 0 : index
      %13 = vector.load %arg5[%c0_10, %c0_11] : memref<1x16xf32, #tpu.memory_space<vmem>>, vector<1x16xf32>
      %14 = vector.broadcast %13 : vector<1x16xf32> to vector<8x16xf32>
      %15 = arith.addf %12, %14 : vector<8x16xf32>
      %c0_12 = arith.constant 0 : index
      %c0_13 = arith.constant 0 : index
      %16 = vector.load %arg6[%c0_12, %c0_13] : memref<8x16xf32, #tpu.memory_space<vmem>>, vector<8x16xf32>
      tpu.vector_store %arg6[%c0_12, %c0_13], %15 {strides = array<i32>} : memref<8x16xf32, #tpu.memory_space<vmem>>, vector<8x16xf32>,
    } else {
    }
    return
  }
  func.func @transform_0(%arg0: i32, %arg1: i32, %arg2: i32) -> (i32, i32) {
    %c0_i32 = arith.constant 0 : i32
    return %arg0, %arg2 : i32, i32
  }
  func.func @transform_1(%arg0: i32, %arg1: i32, %arg2: i32) -> (i32, i32) {
    %c0_i32 = arith.constant 0 : i32
    return %arg2, %arg1 : i32, i32
  }
  func.func @transform_2(%arg0: i32, %arg1: i32, %arg2: i32) -> (i32, i32) {
    %c0_i32 = arith.constant 0 : i32
    %c0_i32_0 = arith.constant 0 : i32
    return %c0_i32, %arg1 : i32, i32
  }
  func.func @transform_3(%arg0: i32, %arg1: i32, %arg2: i32) -> (i32, i32) {
    %c0_i32 = arith.constant 0 : i32
    return %arg0, %arg1 : i32, i32
  }
}

</mosaic_0001>

<bundles_post_ra>
// kernel: tpu_custom_call.1
= control target key start
LH: loop header
LB: loop body
LE: loop exit
PB: predicated region body
PF: predicated region fallthrough
CT: control target
= control target key end

     0   :  { %v179_v1 = vmov 0.0   ;;  %vm180_vm0 = vmmov 0   ;;  %s223_s0 = inlined_call_operand.vmem [shape: f32[8,32], index: 0, kind: input, shape index: {}]   ;;  %s224_s1 = inlined_call_operand.vmem [shape: f32[32,16], index: 1, kind: input, shape index: {}]   ;;  %s225_s2 = inlined_call_operand.vmem [shape: f32[1,16], index: 2, kind: input, shape index: {}]   ;;  %s226_s3 = inlined_call_operand.hbm [shape: f32[8,16], index: 3, kind: output, shape index: {}]  }
   0x1   :  { %v19_v0 = vld [vmem:[%s224_s1 + $0x18] sm:$0xff]  ;;  %143 = vmatprep.subr.mxu0 %v179_v1  ;;  %v18_v2 = vld [vmem:[%s224_s1 + $0x10] sm:$0xff]  ;;  %151 = vmatprep.mubr.msk.f32.mxu0 %vm180_vm0, %v179_v1 }
   0x2   :  { %8 = vsyncpa [#allocation4], 0  ;;  %144 = vmatpush3.msra.mxu0 %v19_v0  ;;  %v17_v3 = vld [vmem:[%s224_s1 + $0x8] sm:$0xff]  ;;  %v16_v4 = vld [vmem:[%s224_s1] sm:$0xff]  ;;  %vm20_vm1 = vcmask 261120   ;;  %vm98_vm2 = vcmask 130048  }
   0x3   :  { %145 = vmatprep.subr.mxu0 %v179_v1  ;;  %v15_v5 = vld [vmem:[%s223_s0] sm:$0xff]  ;;  %s181_s24 = smov [#allocation3]  }
   0x4   :  { %146 = vmatpush3.msra.mxu0 %v18_v2  ;;  %v137_v8 = vld [vmem:[%s225_s2] ss:$0 sm:$0xff]  ;;  %s128_s25 = sshll.u32 %s181_s24, 4  ;;  %s129_s25 = int_to_ptr.vmem [resolvable:$true] %s128_s25 }
   0x5   :  { %147 = vmatprep.subr.mxu0 %v179_v1  ;;  %s157_s1 = scalar_lea.vmem %s129_s25, 128  ;;  %p162_p1 = scmp.lt.s32.totalorder %s129_s25, %s129_s25 }
   0x6   :  { %148 = vmatpush3.msra.mxu0 %v17_v3  ;;  %p158_p0 = scmp.ne.s32.totalorder %s129_s25, %s157_s1  ;;  %p163_p2 = scmp.lt.s32.totalorder %s157_s1, %s157_s1 }
   0x7   :  { %149 = vmatprep.subr.mxu0 %v179_v1 }
   0x8   :  { %150 = vmatpush3.msra.mxu0 %v16_v4  ;;  %p164_p3 = por %p163_p2, %p162_p1 }
   0x9   :  { %152 = vmatmul.mubr.msk.f32.vlgmr.msra.gmra.mxu0 %vm20_vm1, %v15_v5 }
   0xa   :  { %p165_p4 = pnand %p164_p3, %p158_p0 }
  0xc9   :  { %v90_v6 = vpop.f32.mrf.mxu0 }
  0xca   :  { %99 = vst.msk [vmem:[#allocation2] sm:$0xff] %vm98_vm2, %v90_v6 }
  0xcb   :  { %v153_v7 = vpop.f32.mrf.mxu0 }
  0xd1   :  { %v111_v9 = vld [vmem:[#allocation2] sm:$0xff] }
  0xd2   :  { %v119_v10 = vadd.f32 %v137_v8, %v111_v9 }
  0xd4   :  { %121 = vst.msk [vmem:[#allocation3] sm:$0xff] %vm98_vm2, %v119_v10 }
  0xd5   :  { %168 = shalt.err (!%p165_p4)
}
  0xd6   :  { %131 = dma.vmem_to_hbm [thread:$0]  %s129_s25, 128, %s226_s3, [#allocation4]  }
  0xd7   :  { %177 = dma.done.wait [#allocation4], 128  }
  0xd8   :  { %178 = vsyncadd [#allocation4], 4294967168 }
  0xd9   :  { %135 = vsyncpa [#allocation4], 1 }

</bundles_post_ra>
